<compile_context>
chip_gen: v6e
topology: v6e:2x2x1
jax: 0.10.0
libtpu: 0.0.40
codegen_flags: <defaults>
</compile_context>

<pallas_src>
import functools

import jax
import jax.numpy as jnp
from jax import lax
from jax.experimental import pallas as pl
from jax.experimental.pallas import tpu as pltpu


def _round_up(x, m):
    return ((x + m - 1) // m) * m


def _nbytes(shape, dtype):
    n = 1
    for s in shape:
        n *= int(s)
    return n * jnp.dtype(dtype).itemsize


def _vmem_limit_bytes(bytes_needed):
    """Tile-size-derived VMEM limit, capped below physical capacity.

    v5e/v6e have 128 MiB per TensorCore, v7x only 64 MiB; keep headroom so
    large tiles still compile on 128 MiB parts without overcommitting v7x.
    """
    try:
        cap = int(pltpu.get_tpu_info().vmem_capacity_bytes)
    except Exception:  # query unavailable on some jax versions -> safe default
        cap = 64 * 1024 * 1024
    want = max(2 * int(bytes_needed), 32 * 1024 * 1024)
    return int(min(want, (3 * cap) // 4))


def gather_mean_kernel(doc_ids_ref, ctx_ref, doc_tbl_ref, word_tbl_ref,
                       mean_ref, *, num_context, doc_size, vocab_size):
    """One grid step == one batch block of TB rows.

    doc_ids_ref : VMEM (TB, 1)          int32
    ctx_ref     : VMEM (TB, C)          int32
    doc_tbl_ref : VMEM (doc_size, Dp)   f32   (grid-invariant)
    word_tbl_ref: VMEM (vocab_size, Dp) f32   (grid-invariant)
    mean_ref    : VMEM (TB, Dp)         bf16/f32 (output block)
    """
    tb = mean_ref.shape[0]

    did = doc_ids_ref[...]                                      # (TB, 1) i32
    ctx = ctx_ref[...]                                          # (TB, C) i32

    # Vectorized gather via one-hot matmuls on the MXU (no per-row loop, no
    # single-sublane loads/stores).  One-hot / count entries are exact small
    # integers, so the f32 matmul reproduces the embedding rows exactly.
    doc_iota = lax.broadcasted_iota(jnp.int32, (tb, doc_size), 1)
    doc_oh = (did == doc_iota).astype(jnp.float32)              # (TB, doc)

    word_iota = lax.broadcasted_iota(jnp.int32, (tb, vocab_size), 1)
    counts = (ctx[:, 0:1] == word_iota).astype(jnp.float32)     # (TB, vocab)
    for c in range(1, num_context):
        counts = counts + (ctx[:, c:c + 1] == word_iota).astype(jnp.float32)

    summed = jnp.dot(doc_oh, doc_tbl_ref[...],
                     preferred_element_type=jnp.float32)
    summed = summed + jnp.dot(counts, word_tbl_ref[...],
                              preferred_element_type=jnp.float32)
    inv = jnp.float32(1.0 / (num_context + 1))
    mean_ref[...] = (summed * inv).astype(mean_ref.dtype)


def linear_kernel(mean_ref, w_ref, bias_ref, out_ref):
    """(TB, Dp) @ (Dp, TV) + (1, TV) -> lane/sublane-dense (TB, TV) block."""
    out_ref[...] = (
        jnp.dot(mean_ref[...], w_ref[...], preferred_element_type=jnp.float32)
        + bias_ref[...]).astype(out_ref.dtype)


def doc2vec_forward(doc_ids, context_words, doc_table, word_table, weight,
                    bias, *, max_block_b=256, max_block_v=2048,
                    matmul_dtype=jnp.bfloat16):
    """Pallas forward. `weight` is the PyTorch-style [V, D] Linear weight.

    max_block_b can be raised to 512 on the 128 MiB-VMEM parts (v5e/v6e) for
    higher arithmetic intensity on the weight stream; keep 256 on v7x.
    """
    B = doc_ids.shape[0]
    C = context_words.shape[1]
    doc_size, D = doc_table.shape
    vocab_size = word_table.shape[0]
    V = weight.shape[0]

    # Pad the embedding dim to a multiple of 128 (lane-dense mean, MXU K dim).
    Dp = _round_up(D, 128)
    pad_d = Dp - D
    doc_tbl = jnp.pad(doc_table.astype(jnp.float32), ((0, 0), (0, pad_d)))
    word_tbl = jnp.pad(word_table.astype(jnp.float32), ((0, 0), (0, pad_d)))
    # Transposed classifier weight (Dp, V), padded rows are zero; bf16 operand
    # halves the HBM weight stream and uses the bf16-native MXU path.
    w_t = jnp.pad(weight.T.astype(jnp.float32), ((0, pad_d), (0, 0)))
    w_t = w_t.astype(matmul_dtype)
    bias2d = bias.reshape(1, V).astype(jnp.float32)

    doc_ids2d = doc_ids.reshape(B, 1).astype(jnp.int32)
    ctx = context_words.astype(jnp.int32)                       # (B, C)

    TB = B if B <= max_block_b else max_block_b
    TV = V if V <= max_block_v else max_block_v
    nb = pl.cdiv(B, TB)
    nv = pl.cdiv(V, TV)

    # ---- Kernel A: vectorized gather + mean -> (B, Dp) in matmul dtype ----
    vmem_a = (_nbytes((doc_size, Dp), jnp.float32) * 2
              + _nbytes((vocab_size, Dp), jnp.float32) * 2
              + _nbytes((TB, 1), jnp.int32) * 2
              + _nbytes((TB, C), jnp.int32) * 2
              + _nbytes((TB, Dp), matmul_dtype) * 2
              + _nbytes((TB, vocab_size), jnp.float32))
    mean = pl.pallas_call(
        functools.partial(gather_mean_kernel, num_context=C,
                          doc_size=doc_size, vocab_size=vocab_size),
        out_shape=jax.ShapeDtypeStruct((B, Dp), matmul_dtype),
        grid=(nb,),
        in_specs=[
            pl.BlockSpec((TB, 1), lambda i: (i, 0)),
            pl.BlockSpec((TB, C), lambda i: (i, 0)),
            pl.BlockSpec((doc_size, Dp), lambda i: (0, 0)),
            pl.BlockSpec((vocab_size, Dp), lambda i: (0, 0)),
        ],
        out_specs=pl.BlockSpec((TB, Dp), lambda i: (i, 0)),
        compiler_params=pltpu.CompilerParams(
            dimension_semantics=("parallel",),
            vmem_limit_bytes=_vmem_limit_bytes(vmem_a),
        ),
    )(doc_ids2d, ctx, doc_tbl, word_tbl)

    # ---- Kernel B: classifier matmul, V axis outer so each weight tile is
    # streamed from HBM exactly once; both axes independent/parallel. ----
    vmem_b = (_nbytes((TB, Dp), matmul_dtype) * 2
              + _nbytes((Dp, TV), matmul_dtype) * 2
              + _nbytes((1, TV), jnp.float32) * 2
              + _nbytes((TB, TV), jnp.float32) * 2)
    logits = pl.pallas_call(
        linear_kernel,
        out_shape=jax.ShapeDtypeStruct((B, V), jnp.float32),
        grid=(nv, nb),
        in_specs=[
            pl.BlockSpec((TB, Dp), lambda j, i: (i, 0)),
            pl.BlockSpec((Dp, TV), lambda j, i: (0, j)),
            pl.BlockSpec((1, TV), lambda j, i: (0, j)),
        ],
        out_specs=pl.BlockSpec((TB, TV), lambda j, i: (i, j)),
        compiler_params=pltpu.CompilerParams(
            dimension_semantics=("parallel", "parallel"),
            vmem_limit_bytes=_vmem_limit_bytes(vmem_b),
        ),
    )(mean, w_t, bias2d)

    return logits


def doc2vec_reference(doc_ids, context_words, doc_table, word_table, weight,
                      bias):
    """Pure-JAX f32 reference matching the PyTorch forward."""
    doc_vecs = doc_table[doc_ids][:, None, :]           # [B, 1, D]
    word_vecs = word_table[context_words]               # [B, C, D]
    combined = jnp.concatenate([doc_vecs, word_vecs], axis=1)
    mean_vec = combined.mean(axis=1)                    # [B, D]
    return mean_vec @ weight.T + bias                   # [B, V]


if __name__ == "__main__":
    # Small, deterministic problem sizes.
    vocab_size = 64
    doc_size = 16
    embedding_dim = 32
    batch = 2
    num_context = 4

    key = jax.random.PRNGKey(0)
    k_doc, k_word, k_w, k_b, k_ids, k_ctx = jax.random.split(key, 6)

    # nn.Embedding default init ~ N(0, 1); nn.Linear ~ small uniform.
    doc_table = jax.random.normal(k_doc, (doc_size, embedding_dim), jnp.float32)
    word_table = jax.random.normal(k_word, (vocab_size, embedding_dim),
                                   jnp.float32)
    bound = 1.0 / jnp.sqrt(embedding_dim)
    weight = jax.random.uniform(k_w, (vocab_size, embedding_dim), jnp.float32,
                                -bound, bound)
    bias = jax.random.uniform(k_b, (vocab_size,), jnp.float32, -bound, bound)

    doc_ids = jax.random.randint(k_ids, (batch,), 0, doc_size, jnp.int32)
    context_words = jax.random.randint(k_ctx, (batch, num_context), 0,
                                       vocab_size, jnp.int32)

    logits = doc2vec_forward(doc_ids, context_words, doc_table, word_table,
                             weight, bias)
    jax.block_until_ready(logits)

    ref = doc2vec_reference(doc_ids, context_words, doc_table, word_table,
                            weight, bias)
    assert logits.shape == (batch, vocab_size)
    # bf16 matmul operands (f32 accumulation) -> tolerance looser than f32.
    assert jnp.allclose(logits, ref, atol=2e-2, rtol=2e-2), (
        float(jnp.max(jnp.abs(logits - ref))))

    print("KERNEL_OK")
</pallas_src>

<mosaic_0001>
module attributes {stable_mosaic.version = 11 : i64} {
  func.func @gather_mean_kernel(%arg0: i32, %arg1: memref<2x1xi32, #tpu.memory_space<vmem>>, %arg2: memref<2x4xi32, #tpu.memory_space<vmem>>, %arg3: memref<16x128xf32, #tpu.memory_space<vmem>>, %arg4: memref<64x128xf32, #tpu.memory_space<vmem>>, %arg5: memref<2x128xbf16, #tpu.memory_space<vmem>>) attributes {dimension_semantics = [#tpu.dimension_semantics<parallel>], iteration_bounds = array<i64: 1>, scalar_prefetch = 0 : i64, scratch_operands = 0 : i64, tpu.core_type = #tpu.core_type<tc>, window_params = [{transform_indices = @transform_0, window_bounds = array<i64: 2, 1>}, {transform_indices = @transform_1, window_bounds = array<i64: 2, 4>}, {pipeline_mode = #tpu.pipeline_mode<synchronous>, transform_indices = @transform_2, window_bounds = array<i64: 16, 128>}, {pipeline_mode = #tpu.pipeline_mode<synchronous>, transform_indices = @transform_3, window_bounds = array<i64: 64, 128>}, {transform_indices = @transform_4, window_bounds = array<i64: 2, 128>}]} {
    %c0 = arith.constant 0 : index
    %c0_0 = arith.constant 0 : index
    %0 = vector.load %arg1[%c0, %c0_0] : memref<2x1xi32, #tpu.memory_space<vmem>>, vector<2x1xi32>
    %c0_1 = arith.constant 0 : index
    %c0_2 = arith.constant 0 : index
    %1 = vector.load %arg2[%c0_1, %c0_2] : memref<2x4xi32, #tpu.memory_space<vmem>>, vector<2x4xi32>
    %2 = tpu.iota {dimensions = array<i32: 1>} : vector<2x16xi32>
    %3 = vector.broadcast %0 : vector<2x1xi32> to vector<2x16xi32>
    %4 = arith.cmpi eq, %3, %2 : vector<2x16xi32>
    %5 = arith.extui %4 : vector<2x16xi1> to vector<2x16xi32>
    %6 = arith.sitofp %5 : vector<2x16xi32> to vector<2x16xf32>
    %7 = tpu.iota {dimensions = array<i32: 1>} : vector<2x64xi32>
    %8 = vector.extract_strided_slice %1 {offsets = [0, 0], sizes = [2, 1], strides = [1, 1]} : vector<2x4xi32> to vector<2x1xi32>
    %9 = vector.broadcast %8 : vector<2x1xi32> to vector<2x64xi32>
    %10 = arith.cmpi eq, %9, %7 : vector<2x64xi32>
    %11 = arith.extui %10 : vector<2x64xi1> to vector<2x64xi32>
    %12 = arith.sitofp %11 : vector<2x64xi32> to vector<2x64xf32>
    %13 = vector.extract_strided_slice %1 {offsets = [0, 1], sizes = [2, 1], strides = [1, 1]} : vector<2x4xi32> to vector<2x1xi32>
    %14 = vector.broadcast %13 : vector<2x1xi32> to vector<2x64xi32>
    %15 = arith.cmpi eq, %14, %7 : vector<2x64xi32>
    %16 = arith.extui %15 : vector<2x64xi1> to vector<2x64xi32>
    %17 = arith.sitofp %16 : vector<2x64xi32> to vector<2x64xf32>
    %18 = arith.addf %12, %17 : vector<2x64xf32>
    %19 = vector.extract_strided_slice %1 {offsets = [0, 2], sizes = [2, 1], strides = [1, 1]} : vector<2x4xi32> to vector<2x1xi32>
    %20 = vector.broadcast %19 : vector<2x1xi32> to vector<2x64xi32>
    %21 = arith.cmpi eq, %20, %7 : vector<2x64xi32>
    %22 = arith.extui %21 : vector<2x64xi1> to vector<2x64xi32>
    %23 = arith.sitofp %22 : vector<2x64xi32> to vector<2x64xf32>
    %24 = arith.addf %18, %23 : vector<2x64xf32>
    %25 = vector.extract_strided_slice %1 {offsets = [0, 3], sizes = [2, 1], strides = [1, 1]} : vector<2x4xi32> to vector<2x1xi32>
    %26 = vector.broadcast %25 : vector<2x1xi32> to vector<2x64xi32>
    %27 = arith.cmpi eq, %26, %7 : vector<2x64xi32>
    %28 = arith.extui %27 : vector<2x64xi1> to vector<2x64xi32>
    %29 = arith.sitofp %28 : vector<2x64xi32> to vector<2x64xf32>
    %30 = arith.addf %24, %29 : vector<2x64xf32>
    %c0_3 = arith.constant 0 : index
    %c0_4 = arith.constant 0 : index
    %31 = vector.load %arg3[%c0_3, %c0_4] : memref<16x128xf32, #tpu.memory_space<vmem>>, vector<16x128xf32>
    %cst = arith.constant dense<0.000000e+00> : vector<2x128xf32>
    %32 = tpu.matmul %6, %31, %cst {dimension_numbers = #tpu.dot_dimension_numbers<[1], [0], [0], [1], [0, 0, 1, 1], [], []>} : vector<2x16xf32>, vector<16x128xf32>, vector<2x128xf32> -> vector<2x128xf32>
    %c0_5 = arith.constant 0 : index
    %c0_6 = arith.constant 0 : index
    %33 = vector.load %arg4[%c0_5, %c0_6] : memref<64x128xf32, #tpu.memory_space<vmem>>, vector<64x128xf32>
    %cst_7 = arith.constant dense<0.000000e+00> : vector<2x128xf32>
    %34 = tpu.matmul %30, %33, %cst_7 {dimension_numbers = #tpu.dot_dimension_numbers<[1], [0], [0], [1], [0, 0, 1, 1], [], []>} : vector<2x64xf32>, vector<64x128xf32>, vector<2x128xf32> -> vector<2x128xf32>
    %35 = arith.addf %32, %34 : vector<2x128xf32>
    %cst_8 = arith.constant 2.000000e-01 : f32
    %36 = vector.broadcast %cst_8 : f32 to vector<2x128xf32>
    %37 = arith.mulf %35, %36 : vector<2x128xf32>
    %38 = arith.truncf %37 : vector<2x128xf32> to vector<2x128xbf16>
    %c0_9 = arith.constant 0 : index
    %c0_10 = arith.constant 0 : index
    %39 = vector.load %arg5[%c0_9, %c0_10] : memref<2x128xbf16, #tpu.memory_space<vmem>>, vector<2x128xbf16>
    tpu.vector_store %arg5[%c0_9, %c0_10], %38 {strides = array<i32>} : memref<2x128xbf16, #tpu.memory_space<vmem>>, vector<2x128xbf16>,
    return
  }
  func.func @transform_0(%arg0: i32) -> (i32, i32) {
    %c0_i32 = arith.constant 0 : i32
    %c0_i32_0 = arith.constant 0 : i32
    return %arg0, %c0_i32 : i32, i32
  }
  func.func @transform_1(%arg0: i32) -> (i32, i32) {
    %c0_i32 = arith.constant 0 : i32
    %c0_i32_0 = arith.constant 0 : i32
    return %arg0, %c0_i32 : i32, i32
  }
  func.func @transform_2(%arg0: i32) -> (i32, i32) {
    %c0_i32 = arith.constant 0 : i32
    %c0_i32_0 = arith.constant 0 : i32
    %c0_i32_1 = arith.constant 0 : i32
    return %c0_i32, %c0_i32_0 : i32, i32
  }
  func.func @transform_3(%arg0: i32) -> (i32, i32) {
    %c0_i32 = arith.constant 0 : i32
    %c0_i32_0 = arith.constant 0 : i32
    %c0_i32_1 = arith.constant 0 : i32
    return %c0_i32, %c0_i32_0 : i32, i32
  }
  func.func @transform_4(%arg0: i32) -> (i32, i32) {
    %c0_i32 = arith.constant 0 : i32
    %c0_i32_0 = arith.constant 0 : i32
    return %arg0, %c0_i32 : i32, i32
  }
}

</mosaic_0001>

<bundles_post_ra>
// kernel: tpu_custom_call.1
= control target key start
LH: loop header
LB: loop body
LE: loop exit
PB: predicated region body
PF: predicated region fallthrough
CT: control target
= control target key end

     0   :  { %9 = vsyncpa [#allocation3], 0  ;;  %s456_s0 = inlined_call_operand.vmem [shape: s32[2,1], index: 0, kind: input, shape index: {}]   ;;  %s457_s1 = inlined_call_operand.vmem [shape: s32[2,4], index: 1, kind: input, shape index: {}]   ;;  %s458_s2 = inlined_call_operand.hbm [shape: f32[16,128], index: 2, kind: input, shape index: {}]   ;;  %s459_s3 = inlined_call_operand.hbm [shape: f32[64,128], index: 3, kind: input, shape index: {}]   ;;  %s460_s4 = inlined_call_operand.hbm [shape: bf16[2,128], index: 4, kind: output, shape index: {}]  }
   0x1   :  { %10 = vsyncpa [#allocation6], 0 }
   0x2   :  { %11 = vsyncpa [#allocation4], 0  ;;  %s388_s15 = smov [#allocation2]  }
   0x3   :  { %s21_s16 = sshll.u32 %s388_s15, 4  ;;  %s22_s16 = int_to_ptr.vmem [resolvable:$true] %s21_s16 }
   0x4   :  { %s330_s17 = scalar_lea.vmem %s22_s16, 256  ;;  %p335_p1 = scmp.lt.s32.totalorder %s22_s16, %s22_s16 }
   0x5   :  { %p331_p0 = scmp.ne.s32.totalorder %s22_s16, %s330_s17  ;;  %p336_p2 = scmp.lt.s32.totalorder %s330_s17, %s330_s17 }
   0x7   :  { %p337_p3 = por %p336_p2, %p335_p1 }
   0x9   :  { %p338_p4 = pnand %p337_p3, %p331_p0 }
   0xb   :  { %341 = shalt.err (!%p338_p4)
}
   0xc   :  { %s389_s18 = smov 128   ;;  %s390_s19 = smov 8  }
   0xd   :  { %27 = dma.hbm_to_vmem [thread:$0]  %s458_s2, 256, %s22_s16, [#allocation3], %s389_s18, %s389_s18, %s390_s19  }
   0xe   :  { %s391_s22 = smov [#allocation5]  }
   0xf   :  { %s33_s23 = sshll.u32 %s391_s22, 4  ;;  %s34_s23 = int_to_ptr.vmem [resolvable:$true] %s33_s23 }
  0x10   :  { %s350_s24 = scalar_lea.vmem %s34_s23, 1024  ;;  %p355_p6 = scmp.lt.s32.totalorder %s34_s23, %s34_s23 }
  0x11   :  { %p351_p5 = scmp.ne.s32.totalorder %s34_s23, %s350_s24  ;;  %p356_p7 = scmp.lt.s32.totalorder %s350_s24, %s350_s24 }
  0x13   :  { %p357_p8 = por %p356_p7, %p355_p6 }
  0x15   :  { %p358_p9 = pnand %p357_p8, %p351_p5 }
  0x17   :  { %361 = shalt.err (!%p358_p9)
}
  0x18   :  { %39 = dma.hbm_to_vmem [thread:$0]  %s459_s3, 1024, %s34_s23, [#allocation6], %s389_s18, %s389_s18, %s390_s19  }
  0x19   :  { %382 = dma.done.wait [#allocation3], 256  }
  0x1a   :  { %383 = vsyncadd [#allocation3], 4294967040 }
  0x1b   :  { %384 = dma.done.wait [#allocation6], 1024  }
  0x1c   :  { %385 = vsyncadd [#allocation6], 4294966272  ;;  %v392_v0 = vmov 2   ;;  %v393_v1 = vmov 0   ;;  %v394_v2 = vmov 0.0   ;;  %v92_v4 = vld [vmem:[#allocation5 + $0x38] sm:$0xff]  ;;  %v48_v17 = vlaneseq }
  0x1d   :  { %318 = vset.pattern.permute.xlu1 %v392_v0  ;;  %316 = vset.pattern.permute.xlu0 %v393_v1  ;;  %v47_v3 = vld [vmem:[%s457_s1] sm:$0x3]  ;;  %v395_v6 = vmov 3   ;;  %v396_v7 = vmov 1   ;;  %v90_v8 = vld [vmem:[#allocation5 + $0x28] sm:$0xff]  ;;  %v84_v9 = vld [vmem:[#allocation2 + $0x8] sm:$0xff] }
  0x1e   :  { %279 = vmatprep.subr.mxu0 %v394_v2  ;;  %298 = vmatprep.subr.mxu1 %v394_v2  ;;  %v91_v5 = vld [vmem:[#allocation5 + $0x30] sm:$0xff]  ;;  %v89_v10 = vld [vmem:[#allocation5 + $0x20] sm:$0xff]  ;;  %v88_v13 = vld [vmem:[#allocation5 + $0x18] sm:$0xff]  ;;  %vm397_vm0 = vmmov 0   ;;  %v49_v18 = vand.u32 127, %v48_v17  ;;  %vm167_vm5 = vcmask 130048  }
  0x1f   :  { %70 = vperm.xlu1 %318, %v47_v3   ;;  %57 = vperm.xlu0 %316, %v47_v3   ;;  %v83_v11 = vld [vmem:[#allocation2] sm:$0xff]  ;;  %v86_v15 = vld [vmem:[#allocation5 + $0x8] sm:$0xff]  ;;  %v85_v16 = vld [vmem:[#allocation5] sm:$0xff]  ;;  %vm93_vm7 = vcmask 523264  }
  0x20   :  { %280 = vmatpush3.msra.mxu0 %v92_v4  ;;  %299 = vmatpush3.msra.mxu1 %v84_v9  ;;  %v46_v12 = vld [vmem:[%s456_s0] sm:$0x3]  ;;  %s398_s0 = smov [#allocation7]  }
  0x21   :  { %281 = vmatprep.subr.mxu0 %v394_v2  ;;  %300 = vmatprep.subr.mxu1 %v394_v2  ;;  %v87_v14 = vld [vmem:[#allocation5 + $0x10] sm:$0xff]  ;;  %s250_s28 = sshll.u32 %s398_s0, 4  ;;  %s251_s28 = int_to_ptr.vmem [resolvable:$true] %s250_s28 }
  0x22   :  { %282 = vmatpush3.msra.mxu0 %v91_v5  ;;  %301 = vmatpush3.msra.mxu1 %v83_v11  ;;  %s362_s29 = scalar_lea.vmem %s251_s28, 16  ;;  %s366_s30 = scalar_lea.vmem %s251_s28, 32 }
  0x23   :  { %319 = vset.pattern.permute.xlu1 %v395_v6  ;;  %317 = vset.pattern.permute.xlu0 %v396_v7  ;;  %p363_p10 = scmp.ne.s32.totalorder %s251_s28, %s362_s29  ;;  %p367_p11 = scmp.lt.s32.totalorder %s251_s28, %s251_s28 }
  0x24   :  { %77 = vperm.xlu1 %319, %v47_v3   ;;  %63 = vperm.xlu0 %317, %v47_v3   ;;  %p368_p12 = scmp.lt.s32.totalorder %s366_s30, %s362_s29 }
  0x25   :  { %283 = vmatprep.subr.mxu0 %v394_v2  ;;  %302 = vmatprep.mubr.msk.f32.mxu1 %vm397_vm0, %v394_v2 }
  0x26   :  { %284 = vmatpush3.msra.mxu0 %v90_v8  ;;  %295 = vmatprep.mubr.msk.f32.mxu0 %vm397_vm0, %v394_v2  ;;  %p369_p13 = por %p368_p12, %p367_p11 }
  0x27   :  { %285 = vmatprep.subr.mxu0 %v394_v2 }
  0x28   :  { %320 = vset.pattern.permute.xlu1 %v393_v1  ;;  %286 = vmatpush3.msra.mxu0 %v89_v10  ;;  %p370_p0 = pnand %p369_p13, %p363_p10 }
  0x29   :  { %51 = vperm.xlu1 %320, %v46_v12   ;;  %287 = vmatprep.subr.mxu0 %v394_v2 }
  0x2a   :  { %288 = vmatpush3.msra.mxu0 %v88_v13  ;;  %321 = vset.pattern.permute.xlu0 %v395_v6 }
  0x2b   :  { %289 = vmatprep.subr.mxu0 %v394_v2 }
  0x2c   :  { %290 = vmatpush3.msra.mxu0 %v87_v14 }
  0x2d   :  { %291 = vmatprep.subr.mxu0 %v394_v2 }
  0x2e   :  { %292 = vmatpush3.msra.mxu0 %v86_v15 }
  0x2f   :  { %293 = vmatprep.subr.mxu0 %v394_v2 }
  0x30   :  { %294 = vmatpush3.msra.mxu0 %v85_v16 }
  0x9a   :  { %v58_v19 = vpop.permute.xlu0 %57  ;;  %v71_v20 = vpop.permute.xlu1 %70 }
  0x9b   :  { %vm59_vm1 = vcmp.eq.s32.totalorder %v58_v19, %v49_v18  ;;  %vm72_vm2 = vcmp.eq.s32.totalorder %v71_v20, %v49_v18 }
  0x9c   :  { %v261_v23 = vsel %vm59_vm1, 1.0, %v394_v2  ;;  %v263_v26 = vsel %vm72_vm2, 1.0, %v394_v2 }
  0x9f   :  { %v64_v21 = vpop.permute.xlu0 %63  ;;  %v78_v22 = vpop.permute.xlu1 %77 }
  0xa0   :  { %vm65_vm3 = vcmp.eq.s32.totalorder %v64_v21, %v49_v18  ;;  %vm79_vm4 = vcmp.eq.s32.totalorder %v78_v22, %v49_v18 }
  0xa1   :  { %v262_v24 = vsel %vm65_vm3, 1.0, %v394_v2  ;;  %v264_v29 = vsel %vm79_vm4, 1.0, %v394_v2 }
  0xa2   :  { %v68_v25 = vadd.f32 %v262_v24, %v261_v23 }
  0xa4   :  { %v75_v27 = vadd.f32 %v263_v26, %v68_v25  ;;  %v52_v28 = vpop.permute.xlu1 %51 }
  0xa5   :  { %vm53_vm6 = vcmp.eq.s32.totalorder %v52_v28, %v49_v18 }
  0xa6   :  { %v82_v30 = vadd.f32 %v264_v29, %v75_v27  ;;  %v260_v31 = vsel %vm53_vm6, 1.0, %v394_v2 }
  0xa7   :  { %303 = vmatmul.mubr.msk.f32.vlgmr.msra.gmra.mxu1 %vm167_vm5, %v260_v31 }
  0xa8   :  { %296 = vmatmul.mubr.msk.f32.vlgmr.msra.gmra.mxu0 %vm93_vm7, %v82_v30 }
 0x167   :  { %v237_v32 = vpop.f32.mrf.mxu1 }
 0x168   :  { %v163_v33 = vpop.f32.mrf.mxu0 }
 0x169   :  { %v238_v34 = vadd.f32 %v237_v32, %v163_v33  ;;  %v304_v35 = vpop.f32.mrf.mxu1 }
 0x16a   :  { %v297_v36 = vpop.f32.mrf.mxu0 }
 0x16b   :  { %v241_v37 = vmul.f32 0.2, %v238_v34 }
 0x16d   :  { %v242_v38 = vpack.c.bf16 %v241_v37, %v241_v37 }
 0x16f   :  { %243 = vst [vmem:[#allocation7] sm:$0x1] %v242_v38 }
 0x170   :  { %373 = shalt.err (!%p370_p0)
}
 0x171   :  { %253 = dma.vmem_to_hbm [thread:$0]  %s251_s28, 16, %s460_s4, [#allocation4]  }
 0x172   :  { %386 = dma.done.wait [#allocation4], 16  }
 0x173   :  { %387 = vsyncadd [#allocation4], 4294967280 }
 0x174   :  { %257 = vsyncpa [#allocation3], 1 }
 0x175   :  { %258 = vsyncpa [#allocation6], 1 }
 0x176   :  { %259 = vsyncpa [#allocation4], 1 }

</bundles_post_ra>
